<compile_context>
chip_gen: v5e
topology: v5e:2x2
jax: 0.10.0
libtpu: 0.0.40
codegen_flags: <defaults>
</compile_context>

<pallas_src>
import functools
import math

import jax
import jax.numpy as jnp
from jax.experimental import pallas as pl
from jax.experimental.pallas import tpu as pltpu

_LN_EPS = 1e-12
_NEG_BIAS = -1e30  # finite "masked" bias -> no NaN for fully-masked rows

# ----------------------- device-aware sizing helpers ------------------------

try:
    _VMEM_CAP = int(pltpu.get_tpu_info().vmem_capacity_bytes)
except Exception:  # conservative fallback (v7x-sized)
    _VMEM_CAP = 64 * 1024 * 1024

# generation-aware row-tile target: big tiles on 128 MiB parts, smaller on v7x
_ROW_TILE_TARGET = 1024 if _VMEM_CAP >= (96 << 20) else 256


def _row_tile(rows, target=_ROW_TILE_TARGET):
    """Largest row tile <= target that divides rows and is a multiple of 8."""
    for t in (target, 1024, 512, 256, 128, 64, 32, 16, 8):
        if t <= rows and rows % t == 0:
            return t
    return rows


def _vmem_limit(need_bytes):
    """Clamp a per-call scoped-VMEM request to sane bounds."""
    cap = max(32 << 20, min(_VMEM_CAP - (8 << 20), 128 << 20))
    return int(min(max(need_bytes, 16 << 20), cap))


# ----------------------------- Pallas kernels ------------------------------


def _ln_mask_kernel(x_ref, g_ref, b_ref, m_ref, o_ref, *, eps):
    """out = LayerNorm(x) * row_mask   (row-tiled), f32 math, bf16 out."""
    x = x_ref[...].astype(jnp.float32)                   # (tr, dim)
    mu = jnp.mean(x, axis=-1, keepdims=True)
    var = jnp.mean((x - mu) ** 2, axis=-1, keepdims=True)
    y = (x - mu) * jax.lax.rsqrt(var + eps)
    o_ref[...] = ((y * g_ref[...] + b_ref[...]) * m_ref[...]).astype(o_ref.dtype)


def layernorm_mask(x2d, gamma, beta, rowmask, eps=_LN_EPS):
    rows, dim = x2d.shape
    tr = _row_tile(rows)
    cw = lambda i: (0, 0)
    xb = x2d.dtype.itemsize
    need = 2 * (tr * dim * xb + 2 * dim * 4 + tr * 4 + tr * dim * 2) + tr * dim * 4 + (1 << 20)
    return pl.pallas_call(
        functools.partial(_ln_mask_kernel, eps=eps),
        out_shape=jax.ShapeDtypeStruct((rows, dim), jnp.bfloat16),
        grid=(rows // tr,),
        in_specs=[
            pl.BlockSpec((tr, dim), lambda i: (i, 0)),
            pl.BlockSpec((1, dim), cw),
            pl.BlockSpec((1, dim), cw),
            pl.BlockSpec((tr, 1), lambda i: (i, 0)),
        ],
        out_specs=pl.BlockSpec((tr, dim), lambda i: (i, 0)),
        compiler_params=pltpu.CompilerParams(
            dimension_semantics=("parallel",),
            vmem_limit_bytes=_vmem_limit(need)),
    )(x2d, gamma, beta, rowmask)


def _mha_ln_kernel(x_ref, kb_ref, wqkv_ref, bqkv_ref, wo_ref, bo_ref,
                   g_ref, beta_ref, o_ref, ctx_ref, *, n_heads, causal, eps):
    """Grid = (batch,).  Fused QKV projection -> in-kernel head loop
    (scores/softmax/PV) -> single out-projection -> residual + LayerNorm1."""
    x = x_ref[0]                                          # (slen, dim) bf16
    slen, dim = x.shape
    dph = dim // n_heads

    # one lane-dense QKV projection, emitted directly in bf16
    qkv = jnp.dot(x, wqkv_ref[...],
                  preferred_element_type=jnp.bfloat16) + bqkv_ref[...]
    q = qkv[:, 0 * dim:1 * dim]                           # already scaled 1/sqrt(dph)
    k = qkv[:, 1 * dim:2 * dim]
    v = qkv[:, 2 * dim:3 * dim]

    # additive attention bias (never stored to VMEM)
    if causal:
        qpos = jax.lax.broadcasted_iota(jnp.int32, (slen, slen), 0)
        kpos = jax.lax.broadcasted_iota(jnp.int32, (slen, slen), 1)
        bias = jnp.where(kpos <= qpos, 0.0, _NEG_BIAS).astype(jnp.float32)
    else:
        bias = kb_ref[0]                                  # (1, slen) f32, broadcasts

    # static head loop: per-head context written to lane-contiguous slot
    for h in range(n_heads):
        qh = q[:, h * dph:(h + 1) * dph]
        kh = k[:, h * dph:(h + 1) * dph]
        vh = v[:, h * dph:(h + 1) * dph]
        s = jnp.einsum("qe,ke->qk", qh, kh,
                       preferred_element_type=jnp.float32)          # (slen, slen)
        s = s + bias
        m = jnp.max(s, axis=-1, keepdims=True)
        e = jnp.exp(s - m)
        l = jnp.sum(e, axis=-1, keepdims=True)
        w = e * pl.reciprocal(l, approx=True)
        ctx_ref[:, h * dph:(h + 1) * dph] = jnp.dot(
            w.astype(jnp.bfloat16), vh, preferred_element_type=jnp.bfloat16)

    # single lane-dense out-projection + residual + LayerNorm1
    out = jnp.dot(ctx_ref[...], wo_ref[...],
                  preferred_element_type=jnp.float32) + bo_ref[...]
    t = x.astype(jnp.float32) + out
    mu = jnp.mean(t, axis=-1, keepdims=True)
    var = jnp.mean((t - mu) ** 2, axis=-1, keepdims=True)
    y = (t - mu) * jax.lax.rsqrt(var + eps)
    o_ref[0] = (y * g_ref[...] + beta_ref[...]).astype(o_ref.dtype)


def mha_ln_block(x, key_bias3, p, ln_g, ln_b, n_heads, causal):
    """x: (bs, slen, dim) bf16;  key_bias3: (bs, 1, slen) f32 additive bias.
    Returns LayerNorm1(x + SelfAttention(x)) in bf16."""
    bs, slen, dim = x.shape
    cw = lambda b: (0, 0)
    blk = (slen * dim * 2 + slen * 4                      # x, key bias
           + dim * 3 * dim * 2 + 3 * dim * 2              # wqkv, bqkv
           + dim * dim * 2 + dim * 4 + 2 * dim * 4        # wo, bo, ln g/b
           + slen * dim * 2)                              # out
    scratch = slen * dim * 2 + 2 * slen * slen * 4        # ctx + live scores slack
    need = 2 * blk + scratch + (1 << 20)
    return pl.pallas_call(
        functools.partial(_mha_ln_kernel, n_heads=n_heads, causal=causal,
                          eps=_LN_EPS),
        out_shape=jax.ShapeDtypeStruct((bs, slen, dim), jnp.bfloat16),
        grid=(bs,),
        in_specs=[
            pl.BlockSpec((1, slen, dim), lambda b: (b, 0, 0)),     # x
            pl.BlockSpec((1, 1, slen), lambda b: (b, 0, 0)),       # key bias
            pl.BlockSpec((dim, 3 * dim), cw),                      # wqkv
            pl.BlockSpec((1, 3 * dim), cw),                        # bqkv
            pl.BlockSpec((dim, dim), cw),                          # wo
            pl.BlockSpec((1, dim), cw),                            # bo
            pl.BlockSpec((1, dim), cw),                            # ln1 gamma
            pl.BlockSpec((1, dim), cw),                            # ln1 beta
        ],
        out_specs=pl.BlockSpec((1, slen, dim), lambda b: (b, 0, 0)),
        scratch_shapes=[
            pltpu.VMEM((slen, dim), jnp.bfloat16),   # per-head context concat
        ],
        compiler_params=pltpu.CompilerParams(
            dimension_semantics=("parallel",),
            vmem_limit_bytes=_vmem_limit(need)),
    )(x, key_bias3, p["wqkv"], p["bqkv"], p["wo"], p["bo"], ln_g, ln_b)


def _ffn_ln_kernel(x_ref, w1_ref, b1_ref, w2_ref, b2_ref, g_ref, beta_ref,
                   m_ref, o_ref, *, eps):
    """out = LayerNorm2(x + FFN(x)) * row_mask   (row-tiled)."""
    x = x_ref[...]                                        # (tr, dim) bf16
    h = jnp.dot(x, w1_ref[...], preferred_element_type=jnp.float32) + b1_ref[...]
    h = jnp.maximum(h, 0.0)                               # ReLU
    y = (jnp.dot(h.astype(jnp.bfloat16), w2_ref[...],
                 preferred_element_type=jnp.float32) + b2_ref[...])
    t = x.astype(jnp.float32) + y                         # residual
    mu = jnp.mean(t, axis=-1, keepdims=True)
    var = jnp.mean((t - mu) ** 2, axis=-1, keepdims=True)
    t = (t - mu) * jax.lax.rsqrt(var + eps)
    o_ref[...] = ((t * g_ref[...] + beta_ref[...]) * m_ref[...]).astype(o_ref.dtype)


def ffn_ln_block(x2d, p, ln_g, ln_b, rowmask):
    rows, dim = x2d.shape
    hidden = p["w1"].shape[1]
    tr = _row_tile(rows)
    cw = lambda i: (0, 0)
    blk = (tr * dim * 2 + dim * hidden * 2 + hidden * 4
           + hidden * dim * 2 + dim * 4 + 2 * dim * 4 + tr * 4 + tr * dim * 2)
    need = 2 * blk + tr * hidden * 4 + (1 << 20)          # + live hidden activ.
    return pl.pallas_call(
        functools.partial(_ffn_ln_kernel, eps=_LN_EPS),
        out_shape=jax.ShapeDtypeStruct((rows, dim), jnp.bfloat16),
        grid=(rows // tr,),
        in_specs=[
            pl.BlockSpec((tr, dim), lambda i: (i, 0)),
            pl.BlockSpec((dim, hidden), cw), pl.BlockSpec((1, hidden), cw),
            pl.BlockSpec((hidden, dim), cw), pl.BlockSpec((1, dim), cw),
            pl.BlockSpec((1, dim), cw), pl.BlockSpec((1, dim), cw),
            pl.BlockSpec((tr, 1), lambda i: (i, 0)),
        ],
        out_specs=pl.BlockSpec((tr, dim), lambda i: (i, 0)),
        compiler_params=pltpu.CompilerParams(
            dimension_semantics=("parallel",),
            vmem_limit_bytes=_vmem_limit(need)),
    )(x2d, p["w1"], p["b1"], p["w2"], p["b2"], ln_g, ln_b, rowmask)


# --------------------------- model parameters ------------------------------


def init_params(key, *, n_words, dim, n_heads, n_layers, max_pos, pad_index):
    hidden = 4 * dim
    dph = dim // n_heads
    ks = jax.random.split(key, 2 + 6 * n_layers)
    it = iter(ks)
    std = dim ** (-0.5)

    word_emb = jax.random.normal(next(it), (n_words, dim), jnp.float32) * std
    word_emb = word_emb.at[pad_index].set(0.0)            # padding_idx -> zeros
    pos_emb = jax.random.normal(next(it), (max_pos, dim), jnp.float32) * std

    def lin(k, fan_in, fan_out):
        # stored pre-transposed as (in, out); bias as (1, out)
        bound = 1.0 / math.sqrt(fan_in)
        kw, kb = jax.random.split(k)
        w = jax.random.uniform(kw, (fan_in, fan_out), jnp.float32, -bound, bound)
        b = jax.random.uniform(kb, (1, fan_out), jnp.float32, -bound, bound)
        return w, b

    scale = 1.0 / math.sqrt(dph)
    layers = []
    for _ in range(n_layers):
        wq, bq = lin(next(it), dim, dim)
        wq, bq = wq * scale, bq * scale                   # fold 1/sqrt(dph)
        wk, bk = lin(next(it), dim, dim)
        wv, bv = lin(next(it), dim, dim)
        wo, bo = lin(next(it), dim, dim)
        w1, b1 = lin(next(it), dim, hidden)
        w2, b2 = lin(next(it), hidden, dim)
        # fused, lane-dense QKV weight / bias; all MXU operands stored bf16
        wqkv = jnp.concatenate([wq, wk, wv], axis=1).astype(jnp.bfloat16)
        bqkv = jnp.concatenate([bq, bk, bv], axis=1).astype(jnp.bfloat16)
        layers.append(dict(
            attn=dict(wqkv=wqkv, bqkv=bqkv,
                      wo=wo.astype(jnp.bfloat16), bo=bo),
            ln1_g=jnp.ones((1, dim), jnp.float32),
            ln1_b=jnp.zeros((1, dim), jnp.float32),
            ffn=dict(w1=w1.astype(jnp.bfloat16), b1=b1,
                     w2=w2.astype(jnp.bfloat16), b2=b2),
            ln2_g=jnp.ones((1, dim), jnp.float32),
            ln2_b=jnp.zeros((1, dim), jnp.float32),
        ))

    return dict(
        word_emb=word_emb,
        pos_emb=pos_emb,
        ln_emb_g=jnp.ones((1, dim), jnp.float32),
        ln_emb_b=jnp.zeros((1, dim), jnp.float32),
        layers=layers,
        n_heads=n_heads,
    )


# ------------------------------ forward pass -------------------------------


def transformer_fwd(params, x_slen_bs, lengths, causal=False):
    """Mirrors TransformerModel.fwd (encoder, eval mode, no cache).

    x_slen_bs: int32 (slen, bs) word indices
    lengths:   int32 (bs,)
    returns:   float32 (slen, bs, dim)
    """
    slen, bs = x_slen_bs.shape
    dim = params["word_emb"].shape[1]
    n_heads = params["n_heads"]

    x = x_slen_bs.T                                       # (bs, slen)

    # masks (get_masks): only the (bs, slen) key mask is ever materialized;
    # the (bs, slen, slen) attention mask never exists -- the kernel adds a
    # broadcast (1, slen) additive bias (non-causal) or iota bias (causal).
    alen = jnp.arange(slen, dtype=jnp.int32)
    key_mask = (alen[None, :] < lengths[:, None]).astype(jnp.float32)  # (bs, slen)
    key_bias3 = jnp.where(key_mask > 0.5, 0.0, _NEG_BIAS
                          ).astype(jnp.float32).reshape(bs, 1, slen)
    rowmask = key_mask.reshape(bs * slen, 1)

    # embeddings + positional embeddings (gathers = glue in plain JAX)
    positions = jnp.arange(slen, dtype=jnp.int32)
    tensor = params["word_emb"][x] + params["pos_emb"][positions][None, :, :]

    # layer_norm_emb + dropout(eval: no-op) + mask scaling  (fused kernel)
    tensor = layernorm_mask(tensor.reshape(bs * slen, dim),
                            params["ln_emb_g"], params["ln_emb_b"],
                            rowmask).reshape(bs, slen, dim)       # bf16

    for lp in params["layers"]:
        # self-attention + residual + layer_norm1   (one pallas_call)
        tensor = mha_ln_block(tensor, key_bias3, lp["attn"],
                              lp["ln1_g"], lp["ln1_b"], n_heads, causal)
        # FFN + residual + layer_norm2 + mask scaling (one pallas_call)
        tensor = ffn_ln_block(tensor.reshape(bs * slen, dim), lp["ffn"],
                              lp["ln2_g"], lp["ln2_b"],
                              rowmask).reshape(bs, slen, dim)

    return jnp.transpose(tensor, (1, 0, 2)).astype(jnp.float32)  # (slen, bs, dim)


# ---------------------------------- main ------------------------------------


if __name__ == "__main__":
    # small encoder config: n_words=50, dim=32, n_heads=4, n_layers=2
    # (real benchmarks should use dim % 128 == 0 and dph >= 128 for lane-dense MXU)
    n_words, dim, n_heads, n_layers = 50, 32, 4, 2
    pad_index, eos_index = 2, 1
    slen, bs = 8, 2
    max_pos = 64   # N_MAX_POSITIONS truncated to what the test sequence needs

    key = jax.random.PRNGKey(0)
    kp, kx = jax.random.split(key)
    params = init_params(kp, n_words=n_words, dim=dim, n_heads=n_heads,
                         n_layers=n_layers, max_pos=max_pos,
                         pad_index=pad_index)

    lengths = jnp.array([slen, 5], dtype=jnp.int32)
    toks = jax.random.randint(kx, (slen, bs), 3, n_words, dtype=jnp.int32)
    # pad positions beyond each sentence length (like real batches)
    pos = jnp.arange(slen, dtype=jnp.int32)[:, None]
    x = jnp.where(pos < lengths[None, :], toks, pad_index)

    out = transformer_fwd(params, x, lengths, causal=False)
    out = jax.block_until_ready(out)
    assert out.shape == (slen, bs, dim)
    assert bool(jnp.all(jnp.isfinite(out)))

    out_c = transformer_fwd(params, x, lengths, causal=True)   # decoder-style mask
    out_c = jax.block_until_ready(out_c)
    assert out_c.shape == (slen, bs, dim)
    assert bool(jnp.all(jnp.isfinite(out_c)))

    print("KERNEL_OK")
</pallas_src>

<mosaic_0001>
module attributes {stable_mosaic.version = 11 : i64} {
  func.func @_ln_mask_kernel(%arg0: i32, %arg1: memref<16x32xf32, #tpu.memory_space<vmem>>, %arg2: memref<1x32xf32, #tpu.memory_space<vmem>>, %arg3: memref<1x32xf32, #tpu.memory_space<vmem>>, %arg4: memref<16x1xf32, #tpu.memory_space<vmem>>, %arg5: memref<16x32xbf16, #tpu.memory_space<vmem>>) attributes {dimension_semantics = [#tpu.dimension_semantics<parallel>], iteration_bounds = array<i64: 1>, scalar_prefetch = 0 : i64, scratch_operands = 0 : i64, tpu.core_type = #tpu.core_type<tc>, window_params = [{transform_indices = @transform_0, window_bounds = array<i64: 16, 32>}, {pipeline_mode = #tpu.pipeline_mode<synchronous>, transform_indices = @transform_1, window_bounds = array<i64: 1, 32>}, {pipeline_mode = #tpu.pipeline_mode<synchronous>, transform_indices = @transform_2, window_bounds = array<i64: 1, 32>}, {transform_indices = @transform_3, window_bounds = array<i64: 16, 1>}, {transform_indices = @transform_4, window_bounds = array<i64: 16, 32>}]} {
    %c0 = arith.constant 0 : index
    %c0_0 = arith.constant 0 : index
    %0 = vector.load %arg1[%c0, %c0_0] : memref<16x32xf32, #tpu.memory_space<vmem>>, vector<16x32xf32>
    %cst = arith.constant dense<0.000000e+00> : vector<16xf32>
    %1 = vector.multi_reduction <add>, %0, %cst [1] : vector<16x32xf32> to vector<16xf32>
    %2 = vector.shape_cast %1 : vector<16xf32> to vector<16x1xf32>
    %cst_1 = arith.constant 3.200000e+01 : f32
    %3 = vector.broadcast %cst_1 : f32 to vector<16x1xf32>
    %4 = arith.divf %2, %3 : vector<16x1xf32>
    %5 = vector.broadcast %4 : vector<16x1xf32> to vector<16x32xf32>
    %6 = arith.subf %0, %5 : vector<16x32xf32>
    %7 = arith.mulf %6, %6 : vector<16x32xf32>
    %cst_2 = arith.constant dense<0.000000e+00> : vector<16xf32>
    %8 = vector.multi_reduction <add>, %7, %cst_2 [1] : vector<16x32xf32> to vector<16xf32>
    %9 = vector.shape_cast %8 : vector<16xf32> to vector<16x1xf32>
    %cst_3 = arith.constant 3.200000e+01 : f32
    %10 = vector.broadcast %cst_3 : f32 to vector<16x1xf32>
    %11 = arith.divf %9, %10 : vector<16x1xf32>
    %12 = vector.broadcast %4 : vector<16x1xf32> to vector<16x32xf32>
    %13 = arith.subf %0, %12 : vector<16x32xf32>
    %cst_4 = arith.constant 9.99999996E-13 : f32
    %14 = vector.broadcast %cst_4 : f32 to vector<16x1xf32>
    %15 = arith.addf %11, %14 : vector<16x1xf32>
    %16 = math.rsqrt %15 : vector<16x1xf32>
    %17 = vector.broadcast %16 : vector<16x1xf32> to vector<16x32xf32>
    %18 = arith.mulf %13, %17 : vector<16x32xf32>
    %c0_5 = arith.constant 0 : index
    %c0_6 = arith.constant 0 : index
    %19 = vector.load %arg2[%c0_5, %c0_6] : memref<1x32xf32, #tpu.memory_space<vmem>>, vector<1x32xf32>
    %20 = vector.broadcast %19 : vector<1x32xf32> to vector<16x32xf32>
    %21 = arith.mulf %18, %20 : vector<16x32xf32>
    %c0_7 = arith.constant 0 : index
    %c0_8 = arith.constant 0 : index
    %22 = vector.load %arg3[%c0_7, %c0_8] : memref<1x32xf32, #tpu.memory_space<vmem>>, vector<1x32xf32>
    %23 = vector.broadcast %22 : vector<1x32xf32> to vector<16x32xf32>
    %24 = arith.addf %21, %23 : vector<16x32xf32>
    %c0_9 = arith.constant 0 : index
    %c0_10 = arith.constant 0 : index
    %25 = vector.load %arg4[%c0_9, %c0_10] : memref<16x1xf32, #tpu.memory_space<vmem>>, vector<16x1xf32>
    %26 = vector.broadcast %25 : vector<16x1xf32> to vector<16x32xf32>
    %27 = arith.mulf %24, %26 : vector<16x32xf32>
    %28 = arith.truncf %27 : vector<16x32xf32> to vector<16x32xbf16>
    %c0_11 = arith.constant 0 : index
    %c0_12 = arith.constant 0 : index
    %29 = vector.load %arg5[%c0_11, %c0_12] : memref<16x32xbf16, #tpu.memory_space<vmem>>, vector<16x32xbf16>
    tpu.vector_store %arg5[%c0_11, %c0_12], %28 {strides = array<i32>} : memref<16x32xbf16, #tpu.memory_space<vmem>>, vector<16x32xbf16>,
    return
  }
  func.func @transform_0(%arg0: i32) -> (i32, i32) {
    %c0_i32 = arith.constant 0 : i32
    %c0_i32_0 = arith.constant 0 : i32
    return %arg0, %c0_i32 : i32, i32
  }
  func.func @transform_1(%arg0: i32) -> (i32, i32) {
    %c0_i32 = arith.constant 0 : i32
    %c0_i32_0 = arith.constant 0 : i32
    %c0_i32_1 = arith.constant 0 : i32
    return %c0_i32, %c0_i32_0 : i32, i32
  }
  func.func @transform_2(%arg0: i32) -> (i32, i32) {
    %c0_i32 = arith.constant 0 : i32
    %c0_i32_0 = arith.constant 0 : i32
    %c0_i32_1 = arith.constant 0 : i32
    return %c0_i32, %c0_i32_0 : i32, i32
  }
  func.func @transform_3(%arg0: i32) -> (i32, i32) {
    %c0_i32 = arith.constant 0 : i32
    %c0_i32_0 = arith.constant 0 : i32
    return %arg0, %c0_i32 : i32, i32
  }
  func.func @transform_4(%arg0: i32) -> (i32, i32) {
    %c0_i32 = arith.constant 0 : i32
    %c0_i32_0 = arith.constant 0 : i32
    return %arg0, %c0_i32 : i32, i32
  }
}

</mosaic_0001>

<bundles_post_ra>
// kernel: tpu_custom_call.1
= control target key start
LH: loop header
LB: loop body
LE: loop exit
PB: predicated region body
PF: predicated region fallthrough
CT: control target
= control target key end

     0   :  { %9 = vsyncpa [#allocation3], 0  ;;  %s260_s0 = inlined_call_operand.vmem [shape: f32[16,32], index: 0, kind: input, shape index: {}]   ;;  %s261_s1 = inlined_call_operand.vmem [shape: f32[1,32], index: 1, kind: input, shape index: {}]   ;;  %s262_s2 = inlined_call_operand.hbm [shape: f32[1,32], index: 2, kind: input, shape index: {}]   ;;  %s263_s3 = inlined_call_operand.vmem [shape: f32[16,1], index: 3, kind: input, shape index: {}]   ;;  %s264_s4 = inlined_call_operand.hbm [shape: bf16[16,32], index: 4, kind: output, shape index: {}]  }
   0x1   :  { %10 = vsyncpa [#allocation4], 0  ;;  %s20_s17 = sshll.u32 %s262_s2, 4  ;;  %s204_s18 = smov [#allocation2]   ;;  %s21_s17 = int_to_ptr.hbm [resolvable:$true] %s20_s17 }
   0x2   :  { %s22_s19 = sshll.u32 %s204_s18, 4  ;;  %s23_s19 = int_to_ptr.vmem [resolvable:$true] %s22_s19 }
   0x3   :  { %25 = dma.hbm_to_vmem [thread:$0]  %s21_s17, 16, %s23_s19, [#allocation3]  }
   0x4   :  { %200 = dma.done.wait [#allocation3], 16  }
   0x5   :  { %201 = vsyncadd [#allocation3], 4294967280  ;;  %vm34_vm0 = vcmask 261120   ;;  %v32_v0 = vld [vmem:[%s260_s0] sm:$0xff]  ;;  %v33_v2 = vld [vmem:[%s260_s0 + $0x8] sm:$0xff]  ;;  %v205_v4 = vmov 32.0  }
   0x6   :  { %v35_v1 = vsel %vm34_vm0, %v32_v0, 0.0  ;;  %v38_v3 = vsel %vm34_vm0, %v33_v2, 0.0  ;;  %146 = vrcp.f32 %v205_v4  ;;  %v98_v7 = vld [vmem:[%s263_s3] sm:$0xff]  ;;  %v206_v8 = vmov 0   ;;  %v99_v11 = vld [vmem:[%s263_s3 + $0x8] sm:$0xff]  ;;  %s123_s30 = sshll.u32 %s264_s4, 4  ;;  %s124_s30 = int_to_ptr.hbm [resolvable:$true] %s123_s30 }
   0x7   :  { %36 = vadd.xlane.f32.xlu0 %v35_v1  ;;  %142 = vset.pattern.permute.xlu2 %v206_v8  ;;  %v144_v38 = vld [vmem:[%s261_s1] ss:$0 sm:$0xff]  ;;  %vm114_vm8 = vcmask 257024   ;;  %s207_s1 = smov [#allocation5]   ;;  %s208_s5 = smov 64  }
   0x8   :  { %143 = vset.pattern.permute.xlu0 %v206_v8  ;;  %102 = vperm.xlu2 %142, %v98_v7   ;;  %v145_v42 = vld [vmem:[#allocation2] ss:$0 sm:$0xff]  ;;  %s121_s27 = sshll.u32 %s207_s1, 4  ;;  %s209_s6 = smov 4   ;;  %s122_s27 = int_to_ptr.vmem [resolvable:$true] %s121_s27 }
   0xc   :  { %v147_v5 = vpop.eup %146 }
   0xd   :  { %v42_v6 = vmul.f32 32.0, %v147_v5  ;;  %vm46_vm1 = vweird.f32 %v147_v5 }
   0xf   :  { %39 = vadd.xlane.f32.xlu0 %v38_v3  ;;  %v43_v9 = vsub.f32 1.0, %v42_v6 }
  0x10   :  { %107 = vperm.xlu2 %142, %v99_v11  }
  0x11   :  { %v44_v10 = vmul.f32 %v147_v5, %v43_v9 }
  0x13   :  { %v45_v12 = vadd.f32 %v147_v5, %v44_v10 }
  0x15   :  { %v47_v13 = vsel %vm46_vm1, %v147_v5, %v45_v12 }
  0x62   :  { %v103_v46 = vpop.permute.xlu2 %102 }
  0x6a   :  { %v108_v55 = vpop.permute.xlu2 %107 }
  0x7a   :  { %v37_v14 = vpop.xlane.xlu0 %36 }
  0x7b   :  { %v48_v15 = vmul.f32 %v47_v13, %v37_v14 }
  0x7d   :  { %v50_v16 = vsub.f32 %v32_v0, %v48_v15 }
  0x7f   :  { %v52_v17 = vmul.f32 %v50_v16, %v50_v16 }
  0x81   :  { %v54_v18 = vsel %vm34_vm0, %v52_v17, 0.0 }
  0x82   :  { %55 = vadd.xlane.f32.xlu1 %v54_v18  ;;  %v40_v19 = vpop.xlane.xlu0 %39 }
  0x83   :  { %v49_v20 = vmul.f32 %v47_v13, %v40_v19 }
  0x85   :  { %v51_v21 = vsub.f32 %v33_v2, %v49_v20 }
  0x87   :  { %v53_v22 = vmul.f32 %v51_v21, %v51_v21 }
  0x89   :  { %v57_v23 = vsel %vm34_vm0, %v53_v22, 0.0 }
  0x8a   :  { %58 = vadd.xlane.f32.xlu1 %v57_v23 }
  0xf5   :  { %v56_v24 = vpop.xlane.xlu1 %55 }
  0xf6   :  { %v60_v25 = vmul.f32 %v56_v24, %v47_v13 }
  0xf8   :  { %v62_v26 = vadd.f32 1e-12, %v60_v25 }
  0xfa   :  { %148 = vrsqrt.f32 %v62_v26  ;;  %vm70_vm3 = vweird.f32 %v62_v26 }
  0xfd   :  { %v59_v27 = vpop.xlane.xlu1 %58 }
  0xfe   :  { %v61_v28 = vmul.f32 %v59_v27, %v47_v13 }
 0x100   :  { %v149_v29 = vpop.eup %148  ;;  %v63_v30 = vadd.f32 1e-12, %v61_v28 }
 0x101   :  { %v65_v31 = vmul.f32 %v149_v29, %v62_v26  ;;  %vm71_vm2 = vweird.f32 %v149_v29 }
 0x102   :  { %150 = vrsqrt.f32 %v63_v30  ;;  %vm72_vm4 = vmor %vm70_vm3, %vm71_vm2  ;;  %vm80_vm6 = vweird.f32 %v63_v30 }
 0x103   :  { %v66_v32 = vmul.f32 %v149_v29, %v65_v31 }
 0x105   :  { %v67_v33 = vmul.f32 0.5, %v66_v32 }
 0x107   :  { %v68_v34 = vsub.f32 1.5, %v67_v33 }
 0x108   :  { %v151_v35 = vpop.eup %150 }
 0x109   :  { %v69_v36 = vmul.f32 %v149_v29, %v68_v34  ;;  %v75_v37 = vmul.f32 %v151_v35, %v63_v30  ;;  %vm81_vm5 = vweird.f32 %v151_v35 }
 0x10a   :  { %vm82_vm7 = vmor %vm80_vm6, %vm81_vm5 }
 0x10b   :  { %v76_v39 = vmul.f32 %v151_v35, %v75_v37  ;;  %v73_v40 = vsel %vm72_vm4, %v149_v29, %v69_v36 }
 0x10c   :  { %v84_v41 = vmul.f32 %v73_v40, %v50_v16 }
 0x10d   :  { %v77_v43 = vmul.f32 0.5, %v76_v39 }
 0x10e   :  { %v90_v44 = vmul.f32 %v144_v38, %v84_v41 }
 0x10f   :  { %v78_v45 = vsub.f32 1.5, %v77_v43 }
 0x110   :  { %v96_v47 = vadd.f32 %v145_v42, %v90_v44 }
 0x111   :  { %v79_v48 = vmul.f32 %v151_v35, %v78_v45 }
 0x112   :  { %v110_v49 = vmul.f32 %v103_v46, %v96_v47 }
 0x113   :  { %v83_v50 = vsel %vm82_vm7, %v151_v35, %v79_v48 }
 0x114   :  { %v112_v51 = vpack.c.bf16 %v110_v49, %v110_v49  ;;  %v85_v52 = vmul.f32 %v83_v50, %v51_v21 }
 0x116   :  { %115 = vst.msk [vmem:[#allocation5] sm:$0xf] %vm114_vm8, %v112_v51  ;;  %v91_v53 = vmul.f32 %v144_v38, %v85_v52 }
 0x118   :  { %v97_v54 = vadd.f32 %v145_v42, %v91_v53 }
 0x11a   :  { %v111_v56 = vmul.f32 %v108_v55, %v97_v54 }
 0x11c   :  { %v113_v57 = vpack.c.bf16 %v111_v56, %v111_v56 }
 0x11e   :  { %116 = vst.msk [vmem:[#allocation5 + $0x4] sm:$0xf] %vm114_vm8, %v113_v57 }
 0x11f   :  { %129 = dma.vmem_to_hbm [thread:$0]  %s122_s27, 128, %s124_s30, [#allocation4], %s208_s5, %s208_s5, %s209_s6  }
 0x120   :  { %202 = dma.done.wait [#allocation4], 128  }
 0x121   :  { %203 = vsyncadd [#allocation4], 4294967168 }
 0x122   :  { %134 = vsyncpa [#allocation3], 1 }
 0x123   :  { %135 = vsyncpa [#allocation4], 1 }

</bundles_post_ra>
